<compile_context>
chip_gen: v7x
topology: tpu7x:2x2x1
jax: 0.10.0
libtpu: 0.0.40
codegen_flags: <defaults>
</compile_context>

<pallas_src>
import jax
import jax.numpy as jnp
from jax.experimental import pallas as pl
from jax.experimental.pallas import tpu as pltpu

LANE = 128
SUBLANE = 8


def _round_up(v, m):
    return ((v + m - 1) // m) * m


def _largest_divisor_tile(total, quantum, cap):
    """Largest t with t % quantum == 0, total % t == 0, t <= max(cap, quantum)."""
    assert total % quantum == 0
    t = min(total, max(quantum, (cap // quantum) * quantum))
    t = (t // quantum) * quantum
    while t > quantum:
        if total % t == 0:
            return t
        t -= quantum
    return quantum


def _plan_tiles(nc, hw, itemsize, block_budget_bytes):
    """Pick (hw_padded, hw_tile, nc_tile) for lane-dense, VMEM-friendly blocks."""
    nc_can_tile = (nc % SUBLANE == 0) and (nc > SUBLANE)
    nc_min = SUBLANE if nc_can_tile else nc

    if hw % LANE == 0:
        hw_padded = hw
        hw_cap = max(LANE, block_budget_bytes // max(1, nc_min * itemsize))
        hw_tile = _largest_divisor_tile(hw_padded, LANE, hw_cap)
    elif hw < LANE or nc_min * hw * itemsize <= block_budget_bytes:
        # No HW tiling: the full (possibly unaligned) spatial extent is the lane
        # dim of every block (allowed since it equals the full array dim) -- this
        # avoids an HBM pad copy for small / modest unaligned H*W.
        hw_padded = hw
        hw_tile = hw
    else:
        # Large, unaligned H*W: zero-pad it up to a lane multiple so it can be
        # tiled (zeros do not perturb sum / sum-of-squares).
        hw_padded = _round_up(hw, LANE)
        hw_cap = max(LANE, block_budget_bytes // max(1, nc_min * itemsize))
        hw_tile = _largest_divisor_tile(hw_padded, LANE, hw_cap)

    if nc_can_tile:
        nc_cap = max(SUBLANE, block_budget_bytes // max(1, hw_tile * itemsize))
        nc_tile = _largest_divisor_tile(nc, SUBLANE, nc_cap)
    else:
        nc_tile = nc
    return hw_padded, hw_tile, nc_tile


def _compiler_params(dimension_semantics, vmem_limit_bytes):
    kwargs = dict(dimension_semantics=dimension_semantics)
    if vmem_limit_bytes is not None:
        kwargs["vmem_limit_bytes"] = int(vmem_limit_bytes)
    return pltpu.CompilerParams(**kwargs)


def _stats_kernel(x_ref, sum_ref, sq_ref):
    """Accumulate per-row sum and sum-of-squares over the HW (lane) axis."""
    @pl.when(pl.program_id(1) == 0)
    def _():
        sum_ref[...] = jnp.zeros_like(sum_ref)
        sq_ref[...] = jnp.zeros_like(sq_ref)

    x = x_ref[...].astype(jnp.float32)                       # (nc_tile, hw_tile)
    sum_ref[...] += jnp.sum(x, axis=-1, keepdims=True)       # (nc_tile, 1)
    sq_ref[...] += jnp.sum(x * x, axis=-1, keepdims=True)    # (nc_tile, 1)


def _apply_kernel(scale_ref, shift_ref, x_ref, o_ref):
    """o = x * scale + shift  (scale/shift already fold mean, var, weight, bias)."""
    x = x_ref[...].astype(jnp.float32)                       # (nc_tile, hw_tile)
    o_ref[...] = (x * scale_ref[...] + shift_ref[...]).astype(o_ref.dtype)


def switch_norm_2d(x, weight, bias, mean_weight, var_weight, eps=1e-5, *,
                   block_budget_bytes=2 << 20):
    """SwitchNorm2d forward (training mode, using_bn=True). x: (N, C, H, W)."""
    N, C, H, W = x.shape
    NC = N * C
    HW = H * W
    itemsize = x.dtype.itemsize

    HWp, hw_tile, nc_tile = _plan_tiles(NC, HW, itemsize, block_budget_bytes)

    x2 = x.reshape(NC, HW)                                    # keep native dtype
    if HWp != HW:
        x2 = jnp.pad(x2, ((0, 0), (0, HWp - HW)))

    nc_tiles = NC // nc_tile
    hw_tiles = HWp // hw_tile

    block_bytes = nc_tile * hw_tile * itemsize
    est_vmem = 4 * block_bytes + (2 << 20)                    # in+out, double-buffered
    vmem_limit = None if est_vmem <= (14 << 20) else min(est_vmem, 56 << 20)

    # ---------------- pass A: per-row sum / sum-of-squares -----------------
    s, sq = pl.pallas_call(
        _stats_kernel,
        out_shape=(jax.ShapeDtypeStruct((NC, 1), jnp.float32),
                   jax.ShapeDtypeStruct((NC, 1), jnp.float32)),
        grid=(nc_tiles, hw_tiles),
        in_specs=[pl.BlockSpec((nc_tile, hw_tile), lambda r, t: (r, t))],
        out_specs=(pl.BlockSpec((nc_tile, 1), lambda r, t: (r, 0)),
                   pl.BlockSpec((nc_tile, 1), lambda r, t: (r, 0))),
        compiler_params=_compiler_params(("parallel", "arbitrary"), vmem_limit),
    )(x2)

    # ------------- tiny (N, C) glue: mix stats, fold the affine ---------------
    s = s.reshape(N, C)
    sq = sq.reshape(N, C)
    hw_f = jnp.float32(HW)
    mean_in = s / hw_f                                            # (N, C)
    # torch.Tensor.var defaults to unbiased (correction = 1)
    var_in = (sq - hw_f * mean_in * mean_in) / jnp.float32(HW - 1)
    mean_ln = jnp.mean(mean_in, axis=1, keepdims=True)            # (N, 1)
    temp = var_in + mean_in * mean_in
    var_ln = jnp.mean(temp, axis=1, keepdims=True) - mean_ln * mean_ln
    mean_bn = jnp.mean(mean_in, axis=0, keepdims=True)            # (1, C)
    var_bn = jnp.mean(temp, axis=0, keepdims=True) - mean_bn * mean_bn

    mw = jax.nn.softmax(mean_weight.astype(jnp.float32))
    vw = jax.nn.softmax(var_weight.astype(jnp.float32))
    mean = mw[0] * mean_in + mw[1] * mean_ln + mw[2] * mean_bn    # (N, C)
    # NOTE: E[x^2]-E[x]^2 can go slightly negative for near-constant inputs
    # (same behavior as the PyTorch original); not clamped to keep semantics.
    var = vw[0] * var_in + vw[1] * var_ln + vw[2] * var_bn        # (N, C)

    inv_std = jax.lax.rsqrt(var + jnp.float32(eps))
    w2 = weight.reshape(1, C).astype(jnp.float32)
    b2 = bias.reshape(1, C).astype(jnp.float32)
    scale = (w2 * inv_std).reshape(NC, 1)                         # (NC, 1)
    shift = (b2 - mean * (w2 * inv_std)).reshape(NC, 1)           # (NC, 1)

    # --------------- pass B: o = x * scale + shift (tiled, FMA) ---------------
    out = pl.pallas_call(
        _apply_kernel,
        out_shape=jax.ShapeDtypeStruct((NC, HWp), x.dtype),
        grid=(nc_tiles, hw_tiles),
        in_specs=[
            pl.BlockSpec((nc_tile, 1), lambda r, t: (r, 0)),          # scale
            pl.BlockSpec((nc_tile, 1), lambda r, t: (r, 0)),          # shift
            pl.BlockSpec((nc_tile, hw_tile), lambda r, t: (r, t)),    # x
        ],
        out_specs=pl.BlockSpec((nc_tile, hw_tile), lambda r, t: (r, t)),
        compiler_params=_compiler_params(("parallel", "parallel"), vmem_limit),
    )(scale, shift, x2)

    if HWp != HW:
        out = out[:, :HW]
    return out.reshape(N, C, H, W)


def _reference(x, weight, bias, mean_weight, var_weight, eps=1e-5):
    # pure-JAX port of the PyTorch forward (training, using_bn=True)
    N, C, H, W = x.shape
    xr = x.reshape(N, C, -1).astype(jnp.float32)
    hw = xr.shape[-1]
    mean_in = jnp.mean(xr, axis=-1, keepdims=True)
    var_in = jnp.sum((xr - mean_in) ** 2, axis=-1, keepdims=True) / (hw - 1)
    mean_ln = jnp.mean(mean_in, axis=1, keepdims=True)
    temp = var_in + mean_in ** 2
    var_ln = jnp.mean(temp, axis=1, keepdims=True) - mean_ln ** 2
    mean_bn = jnp.mean(mean_in, axis=0, keepdims=True)
    var_bn = jnp.mean(temp, axis=0, keepdims=True) - mean_bn ** 2
    mw = jax.nn.softmax(mean_weight.astype(jnp.float32))
    vw = jax.nn.softmax(var_weight.astype(jnp.float32))
    mean = mw[0] * mean_in + mw[1] * mean_ln + mw[2] * mean_bn
    var = vw[0] * var_in + vw[1] * var_ln + vw[2] * var_bn
    xn = (xr - mean) / jnp.sqrt(var + eps)
    xn = xn.reshape(N, C, H, W)
    return xn * weight.reshape(1, C, 1, 1) + bias.reshape(1, C, 1, 1)


if __name__ == "__main__":
    key = jax.random.PRNGKey(0)

    # deterministic parameter init, matching SwitchNorm2d.reset_parameters()
    C = 4
    weight = jnp.ones((1, C, 1, 1), dtype=jnp.float32)            # last_gamma=False
    bias = jnp.zeros((1, C, 1, 1), dtype=jnp.float32)
    mean_weight = jnp.ones((3,), dtype=jnp.float32)               # using_bn=True
    var_weight = jnp.ones((3,), dtype=jnp.float32)

    fn = jax.jit(switch_norm_2d, static_argnames=("eps", "block_budget_bytes"))

    # main case: (2, 4, 16, 16), HW = 256 (128-aligned), single block
    x = jax.random.normal(key, (2, C, 16, 16), dtype=jnp.float32)
    out = jax.block_until_ready(fn(x, weight, bias, mean_weight, var_weight))
    ref = _reference(x, weight, bias, mean_weight, var_weight)
    assert out.shape == x.shape
    assert jnp.allclose(out, ref, atol=1e-4, rtol=1e-4), "mismatch vs JAX reference"

    # force the multi-tile reduction / apply path (2 HW tiles of 128 lanes)
    out_tiled = jax.block_until_ready(
        fn(x, weight, bias, mean_weight, var_weight, block_budget_bytes=4096))
    assert jnp.allclose(out_tiled, ref, atol=1e-4, rtol=1e-4), "tiled-path mismatch"

    # unaligned spatial extent (HW = 144, not a multiple of 128): full-HW lane dim
    x2 = jax.random.normal(jax.random.PRNGKey(1), (2, C, 12, 12), dtype=jnp.float32)
    out2 = jax.block_until_ready(fn(x2, weight, bias, mean_weight, var_weight))
    ref2 = _reference(x2, weight, bias, mean_weight, var_weight)
    assert jnp.allclose(out2, ref2, atol=1e-4, rtol=1e-4), "unaligned-HW mismatch"

    print("KERNEL_OK")
</pallas_src>

<mosaic_0001>
module attributes {stable_mosaic.version = 11 : i64} {
  func.func @_stats_kernel(%arg0: i32, %arg1: i32, %arg2: memref<8x256xf32, #tpu.memory_space<vmem>>, %arg3: memref<8x1xf32, #tpu.memory_space<vmem>>, %arg4: memref<8x1xf32, #tpu.memory_space<vmem>>) attributes {dimension_semantics = [#tpu.dimension_semantics<parallel>, #tpu.dimension_semantics<arbitrary>], iteration_bounds = array<i64: 1, 1>, scalar_prefetch = 0 : i64, scratch_operands = 0 : i64, tpu.core_type = #tpu.core_type<tc>, window_params = [{transform_indices = @transform_0, window_bounds = array<i64: 8, 256>}, {transform_indices = @transform_1, window_bounds = array<i64: 8, 1>}, {transform_indices = @transform_2, window_bounds = array<i64: 8, 1>}]} {
    %c0_i32 = arith.constant 0 : i32
    %0 = arith.cmpi eq, %arg1, %c0_i32 : i32
    %1 = arith.extui %0 : i1 to i32
    %c0_i32_0 = arith.constant 0 : i32
    %2 = arith.cmpi ne, %1, %c0_i32_0 : i32
    scf.if %2 {
      %cst_11 = arith.constant 0.000000e+00 : f32
      %15 = vector.broadcast %cst_11 : f32 to vector<8x1xf32>
      %c0_12 = arith.constant 0 : index
      %c0_13 = arith.constant 0 : index
      %16 = vector.load %arg3[%c0_12, %c0_13] : memref<8x1xf32, #tpu.memory_space<vmem>>, vector<8x1xf32>
      tpu.vector_store %arg3[%c0_12, %c0_13], %15 {strides = array<i32>} : memref<8x1xf32, #tpu.memory_space<vmem>>, vector<8x1xf32>,
      %cst_14 = arith.constant 0.000000e+00 : f32
      %17 = vector.broadcast %cst_14 : f32 to vector<8x1xf32>
      %c0_15 = arith.constant 0 : index
      %c0_16 = arith.constant 0 : index
      %18 = vector.load %arg4[%c0_15, %c0_16] : memref<8x1xf32, #tpu.memory_space<vmem>>, vector<8x1xf32>
      tpu.vector_store %arg4[%c0_15, %c0_16], %17 {strides = array<i32>} : memref<8x1xf32, #tpu.memory_space<vmem>>, vector<8x1xf32>,
    } else {
    }
    %c0 = arith.constant 0 : index
    %c0_1 = arith.constant 0 : index
    %3 = vector.load %arg2[%c0, %c0_1] : memref<8x256xf32, #tpu.memory_space<vmem>>, vector<8x256xf32>
    %c0_2 = arith.constant 0 : index
    %c0_3 = arith.constant 0 : index
    %4 = vector.load %arg3[%c0_2, %c0_3] : memref<8x1xf32, #tpu.memory_space<vmem>>, vector<8x1xf32>
    %cst = arith.constant dense<0.000000e+00> : vector<8xf32>
    %5 = vector.multi_reduction <add>, %3, %cst [1] : vector<8x256xf32> to vector<8xf32>
    %6 = vector.shape_cast %5 : vector<8xf32> to vector<8x1xf32>
    %7 = arith.addf %4, %6 : vector<8x1xf32>
    %c0_4 = arith.constant 0 : index
    %c0_5 = arith.constant 0 : index
    %8 = vector.load %arg3[%c0_4, %c0_5] : memref<8x1xf32, #tpu.memory_space<vmem>>, vector<8x1xf32>
    tpu.vector_store %arg3[%c0_4, %c0_5], %7 {strides = array<i32>} : memref<8x1xf32, #tpu.memory_space<vmem>>, vector<8x1xf32>,
    %c0_6 = arith.constant 0 : index
    %c0_7 = arith.constant 0 : index
    %9 = vector.load %arg4[%c0_6, %c0_7] : memref<8x1xf32, #tpu.memory_space<vmem>>, vector<8x1xf32>
    %10 = arith.mulf %3, %3 : vector<8x256xf32>
    %cst_8 = arith.constant dense<0.000000e+00> : vector<8xf32>
    %11 = vector.multi_reduction <add>, %10, %cst_8 [1] : vector<8x256xf32> to vector<8xf32>
    %12 = vector.shape_cast %11 : vector<8xf32> to vector<8x1xf32>
    %13 = arith.addf %9, %12 : vector<8x1xf32>
    %c0_9 = arith.constant 0 : index
    %c0_10 = arith.constant 0 : index
    %14 = vector.load %arg4[%c0_9, %c0_10] : memref<8x1xf32, #tpu.memory_space<vmem>>, vector<8x1xf32>
    tpu.vector_store %arg4[%c0_9, %c0_10], %13 {strides = array<i32>} : memref<8x1xf32, #tpu.memory_space<vmem>>, vector<8x1xf32>,
    return
  }
  func.func @transform_0(%arg0: i32, %arg1: i32) -> (i32, i32) {
    %c0_i32 = arith.constant 0 : i32
    return %arg0, %arg1 : i32, i32
  }
  func.func @transform_1(%arg0: i32, %arg1: i32) -> (i32, i32) {
    %c0_i32 = arith.constant 0 : i32
    %c0_i32_0 = arith.constant 0 : i32
    return %arg0, %c0_i32 : i32, i32
  }
  func.func @transform_2(%arg0: i32, %arg1: i32) -> (i32, i32) {
    %c0_i32 = arith.constant 0 : i32
    %c0_i32_0 = arith.constant 0 : i32
    return %arg0, %c0_i32 : i32, i32
  }
}

module attributes {stable_mosaic.version = 11 : i64} {
  func.func @_apply_kernel(%arg0: i32, %arg1: i32, %arg2: memref<8x1xf32, #tpu.memory_space<vmem>>, %arg3: memref<8x1xf32, #tpu.memory_space<vmem>>, %arg4: memref<8x256xf32, #tpu.memory_space<vmem>>, %arg5: memref<8x256xf32, #tpu.memory_space<vmem>>) attributes {dimension_semantics = [#tpu.dimension_semantics<parallel>, #tpu.dimension_semantics<parallel>], iteration_bounds = array<i64: 1, 1>, scalar_prefetch = 0 : i64, scratch_operands = 0 : i64, tpu.core_type = #tpu.core_type<tc>, window_params = [{transform_indices = @transform_0, window_bounds = array<i64: 8, 1>}, {transform_indices = @transform_1, window_bounds = array<i64: 8, 1>}, {transform_indices = @transform_2, window_bounds = array<i64: 8, 256>}, {transform_indices = @transform_3, window_bounds = array<i64: 8, 256>}]} {
    %c0 = arith.constant 0 : index
    %c0_0 = arith.constant 0 : index
    %0 = vector.load %arg4[%c0, %c0_0] : memref<8x256xf32, #tpu.memory_space<vmem>>, vector<8x256xf32>
    %c0_1 = arith.constant 0 : index
    %c0_2 = arith.constant 0 : index
    %1 = vector.load %arg2[%c0_1, %c0_2] : memref<8x1xf32, #tpu.memory_space<vmem>>, vector<8x1xf32>
    %2 = vector.broadcast %1 : vector<8x1xf32> to vector<8x256xf32>
    %3 = arith.mulf %0, %2 : vector<8x256xf32>
    %c0_3 = arith.constant 0 : index
    %c0_4 = arith.constant 0 : index
    %4 = vector.load %arg3[%c0_3, %c0_4] : memref<8x1xf32, #tpu.memory_space<vmem>>, vector<8x1xf32>
    %5 = vector.broadcast %4 : vector<8x1xf32> to vector<8x256xf32>
    %6 = arith.addf %3, %5 : vector<8x256xf32>
    %c0_5 = arith.constant 0 : index
    %c0_6 = arith.constant 0 : index
    %7 = vector.load %arg5[%c0_5, %c0_6] : memref<8x256xf32, #tpu.memory_space<vmem>>, vector<8x256xf32>
    tpu.vector_store %arg5[%c0_5, %c0_6], %6 {strides = array<i32>} : memref<8x256xf32, #tpu.memory_space<vmem>>, vector<8x256xf32>,
    return
  }
  func.func @transform_0(%arg0: i32, %arg1: i32) -> (i32, i32) {
    %c0_i32 = arith.constant 0 : i32
    %c0_i32_0 = arith.constant 0 : i32
    return %arg0, %c0_i32 : i32, i32
  }
  func.func @transform_1(%arg0: i32, %arg1: i32) -> (i32, i32) {
    %c0_i32 = arith.constant 0 : i32
    %c0_i32_0 = arith.constant 0 : i32
    return %arg0, %c0_i32 : i32, i32
  }
  func.func @transform_2(%arg0: i32, %arg1: i32) -> (i32, i32) {
    %c0_i32 = arith.constant 0 : i32
    return %arg0, %arg1 : i32, i32
  }
  func.func @transform_3(%arg0: i32, %arg1: i32) -> (i32, i32) {
    %c0_i32 = arith.constant 0 : i32
    return %arg0, %arg1 : i32, i32
  }
}

</mosaic_0001>

<bundles_post_ra>
// kernel: switch_norm_2d.2
= control target key start
LH: loop header
LB: loop body
LE: loop exit
PB: predicated region body
PF: predicated region fallthrough
CT: control target
= control target key end

     0   :  { %vm14_vm0 = vcmask 7168   ;;  %v43_v2 = vmov 0.0   ;;  %s87_s0 = inlined_call_operand.vmem [shape: f32[8,256], index: 0, kind: input, shape index: {}]   ;;  %s88_s1 = inlined_call_operand.vmem [shape: f32[8,1], index: 1, kind: output, shape index: {0}]   ;;  %s89_s2 = inlined_call_operand.vmem [shape: f32[8,1], index: 2, kind: output, shape index: {1}]  }
   0x1   :  { %v17_v0 = vld [vmem:[%s87_s0] sm:$0xff]  ;;  %v18_v1 = vld [vmem:[%s87_s0 + $0x8] sm:$0xff]  ;;  %15 = vst.msk [vmem:[%s88_s1] sm:$0xff] %vm14_vm0, %v43_v2  ;;  %16 = vst.msk [vmem:[%s89_s2] sm:$0xff] %vm14_vm0, %v43_v2 }
   0x2   :  { %v20_v3 = vadd.f32 %v18_v1, %v17_v0  ;;  %v27_v4 = vmul.f32 %v17_v0, %v17_v0  ;;  %v28_v5 = vmul.f32 %v18_v1, %v18_v1 }
   0x4   :  { %21 = vadd.xlane.f32.xlu0 %v20_v3  ;;  %v29_v6 = vadd.f32 %v28_v5, %v27_v4 }
   0x8   :  { %30 = vadd.xlane.f32.xlu0 %v29_v6  ;;  %v19_v7 = vld [vmem:[%s88_s1] sm:$0xff] }
   0x9   :  { %v26_v10 = vld [vmem:[%s89_s2] sm:$0xff] }
  0x91   :  { %v22_v8 = vpop.xlane.xlu0 %21 }
  0x92   :  { %v23_v9 = vadd.f32 %v22_v8, %v19_v7 }
  0x94   :  { %25 = vst.msk [vmem:[%s88_s1] sm:$0xff] %vm14_vm0, %v23_v9 }
  0x95   :  { %v31_v11 = vpop.xlane.xlu0 %30 }
  0x96   :  { %v32_v12 = vadd.f32 %v31_v11, %v26_v10 }
  0x98   :  { %33 = vst.msk [vmem:[%s89_s2] sm:$0xff] %vm14_vm0, %v32_v12 }

// kernel: switch_norm_2d.3
= control target key start
LH: loop header
LB: loop body
LE: loop exit
PB: predicated region body
PF: predicated region fallthrough
CT: control target
= control target key end

     0   :  { %v40_v0 = vmov 0   ;;  %s79_s0 = inlined_call_operand.vmem [shape: f32[8,1], index: 0, kind: input, shape index: {}]   ;;  %s80_s1 = inlined_call_operand.vmem [shape: f32[8,1], index: 1, kind: input, shape index: {}]   ;;  %s81_s2 = inlined_call_operand.vmem [shape: f32[8,256], index: 2, kind: input, shape index: {}]   ;;  %s82_s3 = inlined_call_operand.vmem [shape: f32[8,256], index: 3, kind: output, shape index: {}]  }
   0x1   :  { %39 = vset.pattern.permute.xlu0 %v40_v0  ;;  %v16_v1 = vld [vmem:[%s79_s0] sm:$0xff]  ;;  %v15_v4 = vld [vmem:[%s81_s2 + $0x8] sm:$0xff] }
   0x2   :  { %19 = vperm.xlu0 %39, %v16_v1   ;;  %v24_v2 = vld [vmem:[%s80_s1] sm:$0xff] }
   0x3   :  { %v14_v3 = vld [vmem:[%s81_s2] sm:$0xff] }
   0x6   :  { %27 = vperm.xlu0 %39, %v24_v2  }
  0x81   :  { %v20_v5 = vpop.permute.xlu0 %19 }
  0x82   :  { %v22_v6 = vmul.f32 %v20_v5, %v14_v3  ;;  %v23_v7 = vmul.f32 %v20_v5, %v15_v4 }
  0x85   :  { %v28_v8 = vpop.permute.xlu0 %27 }
  0x86   :  { %v30_v9 = vadd.f32 %v28_v8, %v22_v6  ;;  %v31_v10 = vadd.f32 %v28_v8, %v23_v7 }
  0x88   :  { %32 = vst [vmem:[%s82_s3] sm:$0xff] %v30_v9  ;;  %33 = vst [vmem:[%s82_s3 + $0x8] sm:$0xff] %v31_v10 }

</bundles_post_ra>
